<compile_context>
chip_gen: v7x
topology: tpu7x:2x2x1
jax: 0.10.0
libtpu: 0.0.40
codegen_flags: <defaults>
</compile_context>

<pallas_src>
import functools

import jax
import jax.numpy as jnp
import numpy as np
from jax.experimental import pallas as pl
from jax.experimental.pallas import tpu as pltpu


def patch_extract_kernel(x_ref, o_ref, *, patch_size, nphb, npw):
    """One grid step = one batch element x `nphb` rows of patches.

    x_ref: (1, C, nphb*P, W)         VMEM input tile  (W = npw*P)
    o_ref: (1, nphb, npw, C, P, P)   VMEM output tile
    """
    P = patch_size
    # Short, static loops (nphb is usually 1; npw = W/P, e.g. 2 here, 14 for
    # ViT-B/16).  Each iteration copies a whole (C, P, P) slab at vreg
    # granularity -- no (1, P) partial-row stores.
    for pr in range(nphb):
        for pw in range(npw):
            o_ref[0, pr, pw, :, :, :] = x_ref[
                0, :, pr * P:(pr + 1) * P, pw * P:(pw + 1) * P
            ]


def _sublane_multiple(dtype):
    """Native sublane granularity for this dtype (8 rows of 32-bit; packed
    sub-32-bit dtypes need proportionally more rows)."""
    itemsize = jnp.dtype(dtype).itemsize
    return 8 * max(1, 4 // itemsize)


def patch_extractor(x, patch_size=8):
    """Pallas equivalent of PatchExtractor.forward for NCHW input."""
    B, C, H, W = x.shape
    assert H % patch_size == 0 and W % patch_size == 0, (
        f"Input height ({H}) and width ({W}) must be divisible by "
        f"patch size ({patch_size})"
    )
    nph = H // patch_size
    npw = W // patch_size
    num_patches = nph * npw
    patch_dim = C * patch_size * patch_size

    # Rows of the image per grid step: the smallest multiple of patch_size
    # that divides H and is sublane-aligned (falls back to the whole height,
    # which is always layout-legal because it equals the full dim).
    sub = _sublane_multiple(x.dtype)
    nphb = nph
    for k in range(1, nph + 1):
        if nph % k == 0 and (k * patch_size) % sub == 0:
            nphb = k
            break
    rows_blk = nphb * patch_size
    grid = (B, nph // nphb)

    kernel = functools.partial(
        patch_extract_kernel, patch_size=patch_size, nphb=nphb, npw=npw
    )

    out6 = pl.pallas_call(
        kernel,
        out_shape=jax.ShapeDtypeStruct(
            (B, nph, npw, C, patch_size, patch_size), x.dtype
        ),
        grid=grid,
        in_specs=[
            pl.BlockSpec((1, C, rows_blk, W), lambda b, r: (b, 0, r, 0)),
        ],
        out_specs=pl.BlockSpec(
            (1, nphb, npw, C, patch_size, patch_size),
            lambda b, r: (b, r, 0, 0, 0, 0),
        ),
        compiler_params=pltpu.CompilerParams(
            dimension_semantics=("parallel", "parallel"),
        ),
    )(x)

    # Free row-major merge of the trailing dims (no HBM data movement).
    return out6.reshape(B, num_patches, patch_dim)


def patch_extractor_ref(x, patch_size=8):
    """Pure-JAX reference matching the PyTorch semantics exactly."""
    B, C, H, W = x.shape
    nph = H // patch_size
    npw = W // patch_size
    patches = x.reshape(B, C, nph, patch_size, npw, patch_size)
    patches = jnp.transpose(patches, (0, 2, 4, 1, 3, 5))  # (B, nph, npw, C, P, P)
    return patches.reshape(B, nph * npw, C * patch_size * patch_size)


if __name__ == "__main__":
    # PatchExtractor has no learnable parameters (patch_size only).
    PATCH_SIZE = 8
    B, C, H, W = 2, 4, 16, 16

    key = jax.random.PRNGKey(0)
    x = jax.random.normal(key, (B, C, H, W), dtype=jnp.float32)

    out = patch_extractor(x, patch_size=PATCH_SIZE)
    out = jax.block_until_ready(out)

    expected = patch_extractor_ref(x, patch_size=PATCH_SIZE)
    assert out.shape == (
        B,
        (H // PATCH_SIZE) * (W // PATCH_SIZE),
        C * PATCH_SIZE * PATCH_SIZE,
    )
    np.testing.assert_allclose(
        np.asarray(out), np.asarray(expected), rtol=0, atol=0
    )

    print("KERNEL_OK")
</pallas_src>

<mosaic_0001>
module attributes {stable_mosaic.version = 11 : i64} {
  func.func @patch_extract_kernel(%arg0: i32, %arg1: i32, %arg2: memref<1x4x8x16xf32, #tpu.memory_space<vmem>>, %arg3: memref<1x1x2x4x8x8xf32, #tpu.memory_space<vmem>>) attributes {dimension_semantics = [#tpu.dimension_semantics<parallel>, #tpu.dimension_semantics<parallel>], iteration_bounds = array<i64: 2, 2>, scalar_prefetch = 0 : i64, scratch_operands = 0 : i64, tpu.core_type = #tpu.core_type<tc>, window_params = [{transform_indices = @transform_0, window_bounds = array<i64: 1, 4, 8, 16>}, {transform_indices = @transform_1, window_bounds = array<i64: 1, 1, 2, 4, 8, 8>}]} {
    %c0 = arith.constant 0 : index
    %c0_0 = arith.constant 0 : index
    %c0_1 = arith.constant 0 : index
    %c0_2 = arith.constant 0 : index
    %0 = vector.load %arg2[%c0, %c0_0, %c0_1, %c0_2] : memref<1x4x8x16xf32, #tpu.memory_space<vmem>>, vector<1x4x8x8xf32>
    %1 = vector.shape_cast %0 : vector<1x4x8x8xf32> to vector<4x8x8xf32>
    %c0_3 = arith.constant 0 : index
    %c0_4 = arith.constant 0 : index
    %c0_5 = arith.constant 0 : index
    %c0_6 = arith.constant 0 : index
    %c0_7 = arith.constant 0 : index
    %c0_8 = arith.constant 0 : index
    %2 = vector.load %arg3[%c0_3, %c0_4, %c0_5, %c0_6, %c0_7, %c0_8] : memref<1x1x2x4x8x8xf32, #tpu.memory_space<vmem>>, vector<1x1x1x4x8x8xf32>
    %3 = vector.shape_cast %2 : vector<1x1x1x4x8x8xf32> to vector<4x8x8xf32>
    %4 = vector.shape_cast %1 : vector<4x8x8xf32> to vector<1x1x1x4x8x8xf32>
    tpu.vector_store %arg3[%c0_3, %c0_4, %c0_5, %c0_6, %c0_7, %c0_8], %4 {strides = array<i32>} : memref<1x1x2x4x8x8xf32, #tpu.memory_space<vmem>>, vector<1x1x1x4x8x8xf32>,
    %c0_9 = arith.constant 0 : index
    %c0_10 = arith.constant 0 : index
    %c0_11 = arith.constant 0 : index
    %c8 = arith.constant 8 : index
    %5 = vector.load %arg2[%c0_9, %c0_10, %c0_11, %c8] : memref<1x4x8x16xf32, #tpu.memory_space<vmem>>, vector<1x4x8x8xf32>
    %6 = vector.shape_cast %5 : vector<1x4x8x8xf32> to vector<4x8x8xf32>
    %c0_12 = arith.constant 0 : index
    %c0_13 = arith.constant 0 : index
    %c1 = arith.constant 1 : index
    %c0_14 = arith.constant 0 : index
    %c0_15 = arith.constant 0 : index
    %c0_16 = arith.constant 0 : index
    %7 = vector.load %arg3[%c0_12, %c0_13, %c1, %c0_14, %c0_15, %c0_16] : memref<1x1x2x4x8x8xf32, #tpu.memory_space<vmem>>, vector<1x1x1x4x8x8xf32>
    %8 = vector.shape_cast %7 : vector<1x1x1x4x8x8xf32> to vector<4x8x8xf32>
    %9 = vector.shape_cast %6 : vector<4x8x8xf32> to vector<1x1x1x4x8x8xf32>
    tpu.vector_store %arg3[%c0_12, %c0_13, %c1, %c0_14, %c0_15, %c0_16], %9 {strides = array<i32>} : memref<1x1x2x4x8x8xf32, #tpu.memory_space<vmem>>, vector<1x1x1x4x8x8xf32>,
    return
  }
  func.func @transform_0(%arg0: i32, %arg1: i32) -> (i32, i32, i32, i32) {
    %c0_i32 = arith.constant 0 : i32
    %c0_i32_0 = arith.constant 0 : i32
    %c0_i32_1 = arith.constant 0 : i32
    return %arg0, %c0_i32, %arg1, %c0_i32_0 : i32, i32, i32, i32
  }
  func.func @transform_1(%arg0: i32, %arg1: i32) -> (i32, i32, i32, i32, i32, i32) {
    %c0_i32 = arith.constant 0 : i32
    %c0_i32_0 = arith.constant 0 : i32
    %c0_i32_1 = arith.constant 0 : i32
    %c0_i32_2 = arith.constant 0 : i32
    %c0_i32_3 = arith.constant 0 : i32
    return %arg0, %arg1, %c0_i32, %c0_i32_0, %c0_i32_1, %c0_i32_2 : i32, i32, i32, i32, i32, i32
  }
}

</mosaic_0001>

<bundles_post_ra>
// kernel: tpu_custom_call.1
= control target key start
LH: loop header
LB: loop body
LE: loop exit
PB: predicated region body
PF: predicated region fallthrough
CT: control target
= control target key end

     0   :  { %6 = vsyncpa [#allocation3], 0  ;;  %s747_s0 = inlined_call_operand.hbm [shape: f32[2,4,16,16], index: 0, kind: input, shape index: {}]   ;;  %s748_s1 = inlined_call_operand.hbm [shape: f32[2,2,2,4,8,8], index: 1, kind: output, shape index: {}]  }
   0x1   :  { %8 = vsyncpa [#allocation3 + $0x1], 0 }
   0x2   :  { %9 = vsyncpa [#allocation4], 0 }
   0x3   :  { %11 = vsyncpa [#allocation4 + $0x1], 0  ;;  %s543_s6 = smov 0   ;;  %s545_s7 = smov 0  }
   0x4   :  { %s547_s8 = smov 0   ;;  %s549_s9 = smov 0  }
   0x5   :  { %s551_s10 = smov 0   ;;  %s553_s11 = smov 0  }
   0x6   :  { %s555_s12 = smov 0   ;;  %s557_s13 = smov 0  }
   0x7 LB: > { %s291_s14 = sadd.s32 4294967295, %s523_s13   ;;  %s292_s15 = sadd.s32 4294967294, %s523_s13   ;;  %s523_s13 = sphi %s557_s13, %s17_s13   ;;  %s519_s12 = sphi %s555_s12, %s763_s12   ;;  %s515_s11 = sphi %s553_s11, %s762_s11   ;;  %s511_s10 = sphi %s551_s10, %s761_s10   ;;  %s507_s9 = sphi %s549_s9, %s760_s9   ;;  %s503_s8 = sphi %s547_s8, %s759_s8   ;;  %s499_s7 = sphi %s545_s7, %s758_s7   ;;  %s495_s6 = sphi %s543_s6, %s757_s6  }
   0x8   : > { %s26_s16 = sadd.s32 1, %s515_s11  ;;  %s29_s17 = sadd.s32 1, %s519_s12 }
   0x9   : > { %p27_p0 = scmp.ge.s32.totalorder %s26_s16, 2  ;;  %s38_s18 = sadd.s32 1, %s503_s8 }
   0xa   : > { %p45_p1 = scmp.ne.s32.totalorder %s503_s8, %s499_s7  ;;  %p46_p2 = scmp.eq.s32.totalorder %s523_s13, 0 }
   0xb   : > { %s765_s16 = smov (%p27_p0, %s26_s16), 0  ;;  %s767_s17 = smov (!%p27_p0, %s29_s17), %s519_s12 }
   0xc   : > { %s34_s19 = ssub.s32 %s515_s11, %s765_s16  ;;  %p596_p3 = por %p46_p2, %p45_p1 }
   0xd   : > { %p31_p4 = scmp.ge.s32.totalorder %s767_s17, 2  ;;  %p51_p5 = scmp.ne.s32.totalorder %s499_s7, %s495_s6 }
   0xe   : > { %p52_p6 = scmp.eq.s32.totalorder %s291_s14, 0  ;;  %p77_p7 = scmp.eq.s32.totalorder %s291_s14, 3 }
   0xf   : > { %s769_s17 = smov (%p31_p4, %s767_s17), 0  ;;  %p83_p10 = scmp.eq.s32.totalorder %s292_s15, 3 }
  0x10   : > { %p604_p8 = por %p52_p6, %p51_p5  ;;  %p608_p9 = por %p77_p7, %p45_p1 }
  0x11   : > { %s33_s23 = ssub.s32 %s519_s12, %s769_s17  ;;  %p614_p12 = por %p83_p10, %p51_p5 }
  0x12   : > { %s752_s22 = scalar_select %p608_p9, 1, 0 }
  0x13   : > { %s35_s24 = sor.u32 %s34_s19, %s33_s23  ;;  %p323_p13 = scmp.lt.s32.totalorder %s523_s13, 4 }
  0x14   : > { %p36_p11 = scmp.eq.s32.totalorder %s35_s24, 0  ;;  %s103_s26 = sand.u32 1, %s503_s8  }
  0x15   : > { %s753_s25 = scalar_select %p614_p12, 1, 0 }
  0x16   : > { %s621_s27 = scalar_select %p36_p11, %s503_s8, %s38_s18  }
  0x17   : > { %s295_s28 = sshll.u32 %s103_s26, 5  ;;  %s296_s29 = sshll.u32 %s519_s12, 3 }
  0x18   : > { %s112_s30 = sadd.s32 %s515_s11, %s296_s29  ;;  %s107_s2 = scalar_lea.vmem [#allocation2], %s295_s28 }
  0x19   : > { %s115_s3 = sshll.u32 %s107_s2, 4  ;;  %s297_s4 = sshll.u32 %s112_s30, 7  ;;  %s625_s3 = int_to_ptr.vmem [resolvable:$true] %s115_s3 }
  0x1a   : > { %s630_s15 = scalar_lea.hbm %s747_s0, %s297_s4  ;;  %p634_p0 = pnand %p323_p13, %p596_p3 }
  0x1b   : > { %s638_s19 = scalar_lea.sflag [#allocation3], %s103_s26  ;;  %s395_s23 = scalar_lea.hbm %s630_s15, 512 }
  0x1c   : > { %p396_p1 = scmp.ne.s32.totalorder %s630_s15, %s395_s23  ;;  %p397_p2 = pneg %p634_p0 }
  0x1d   : > { %s400_s28 = scalar_lea.hbm %s747_s0, 2048  ;;  %p401_p3 = scmp.lt.u32.totalorder %s630_s15, %s747_s0 }
  0x1e   : > { %p398_p4 = pnand %p397_p2, %p396_p1  ;;  %p402_p6 = scmp.lt.u32.totalorder %s400_s28, %s395_s23 }
  0x1f   : > { %p404_p10 = scmp.lt.u32.totalorder %s395_s23, %s630_s15 }
  0x20   : > { %p399_p5 = pneg %p398_p4  ;;  %p403_p7 = por %p402_p6, %p401_p3 }
  0x22   : > { %p405_p11 = por %p404_p10, %p403_p7 }
  0x24   : > { %p406_p13 = pnand %p405_p11, %p399_p5 }
  0x26   : > { %409 = shalt.err (!%p406_p13)
}
  0x27   : > { %s410_s26 = scalar_lea.vmem %s625_s3, 512  ;;  %s525_s2 = smov [#allocation2]  }
  0x28   : > { %p411_p1 = scmp.ne.s32.totalorder %s625_s3, %s410_s26  ;;  %s415_s4 = sshll.u32 %s525_s2, 4  ;;  %s416_s4 = int_to_ptr.vmem [resolvable:$false] %s415_s4 }
  0x29   : > { %s417_s5 = scalar_lea.vmem %s416_s4, 1024  ;;  %p418_p9 = scmp.lt.s32.totalorder %s625_s3, %s416_s4 }
  0x2a   : > { %p413_p4 = pnand %p411_p1, %p397_p2  ;;  %p419_p3 = scmp.lt.s32.totalorder %s417_s5, %s410_s26 }
  0x2c   : > { %p414_p12 = pneg %p413_p4  ;;  %p420_p6 = por %p419_p3, %p418_p9 }
  0x2e   : > { %p421_p7 = pnand %p420_p6, %p414_p12 }
  0x30   : > { %424 = shalt.err (!%p421_p7)
}
  0x31   : > { %s526_s14 = smov 256   ;;  %s527_s23 = smov 128  }
  0x32   : > { %s528_s20 = smov 8   ;;  %p298_p2 = scmp.ge.s32.totalorder %s523_s13, 1 }
  0x33   : > { %318 = dma.hbm_to_vmem [thread:$0]  (!%p634_p0), %s630_s15, 512, %s625_s3, %s638_s19, %s526_s14, %s527_s23, %s528_s20  }
  0x34   : > { %p123_p5 = scmp.lt.s32.totalorder %s523_s13, 5 }
  0x36   : > { %p124_p10 = pnand %p298_p2, %p123_p5 }
  0x37   : > { %s669_s24 = sand.u32 (!%p124_p10), 1, %s499_s7  }
  0x38   : > { %127 = sbr.rel (%p124_p10) target bundleno = 199 (0xc7), region = 24  ;;  %s299_s28 = sshll.u32 (!%p124_p10), %s669_s24, 5 }
  0x39   : > { %s130_s29 = scalar_lea.sflag (!%p124_p10), [#allocation3], %s669_s24  ;;  %s133_s30 = scalar_lea.vmem (!%p124_p10), [#allocation2], %s299_s28 }
  0x3f   : > { %486 = dma.done.wait (%p604_p8), %s130_s29, 512  }
  0x40   : > { %488 = vsyncadd (%p604_p8), %s130_s29, 4294966784  ;;  %s300_s3 = sshll.u32 %s669_s24, 6  ;;  %v163_v0 = vld [vmem:[%s133_s30 + $0x10] sm:$0xff]  ;;  %v161_v1 = vld [vmem:[%s133_s30] sm:$0xff]  ;;  %vm156_vm0 = vcmask 64512   ;;  %s529_s15 = smov 120  }
  0x41   : > { %v164_v2 = vld [vmem:[%s133_s30 + $0x18] sm:$0xff]  ;;  %173 = vrot.lane.b32.xlu1 %v163_v0, %s529_s15  ;;  %169 = vrot.lane.b32.xlu0 %v161_v1, %s529_s15  ;;  %v162_v3 = vld [vmem:[%s133_s30 + $0x8] sm:$0xff]  ;;  %s151_s18 = scalar_lea.vmem [#allocation5], %s300_s3  ;;  %s306_s21 = sshll.u32 %s507_s9, 3 }
  0x42   : > { %157 = vst.msk [vmem:[%s151_s18] sm:$0xff] %vm156_vm0, %v161_v1  ;;  %159 = vst.msk [vmem:[%s151_s18 + $0x10] sm:$0xff] %vm156_vm0, %v163_v0  ;;  %s307_s19 = sshll.u32 %s511_s10, 4  ;;  %s202_s2 = sshll.u32 %s151_s18, 4  ;;  %s686_s2 = int_to_ptr.vmem [resolvable:$true] %s202_s2 }
  0x43   : > { %160 = vst.msk [vmem:[%s151_s18 + $0x18] sm:$0xff] %vm156_vm0, %v164_v2  ;;  %158 = vst.msk [vmem:[%s151_s18 + $0x8] sm:$0xff] %vm156_vm0, %v162_v3  ;;  %s199_s26 = sadd.s32 %s307_s19, %s306_s21  ;;  %s187_s10 = scalar_lea.sflag [#allocation4], %s669_s24 }
  0x44   : > { %s308_s4 = sshll.u32 %s199_s26, 7  ;;  %s425_s23 = scalar_lea.vmem %s686_s2, 1024 }
  0x45   : > { %175 = vrot.lane.b32.xlu1 %v164_v2, %s529_s15  ;;  %171 = vrot.lane.b32.xlu0 %v162_v3, %s529_s15  ;;  %s691_s9 = scalar_lea.hbm %s748_s1, %s308_s4  ;;  %p426_p8 = scmp.ne.s32.totalorder %s686_s2, %s425_s23 }
  0x46   : > { %p755_p9 = scmp.ne.s32.totalorder %s752_s22, 0  ;;  %s530_s20 = smov [#allocation5]  }
  0x47   : > { %s429_s28 = sshll.u32 %s530_s20, 4  ;;  %s430_s28 = int_to_ptr.vmem [resolvable:$false] %s429_s28 }
  0x48   : > { %p427_p12 = pnand %p426_p8, %p755_p9  ;;  %s431_s29 = scalar_lea.vmem %s430_s28, 2048 }
  0x49   : > { %p432_p11 = scmp.lt.s32.totalorder %s686_s2, %s430_s28  ;;  %p433_p13 = scmp.lt.s32.totalorder %s431_s29, %s425_s23 }
  0x4a   : > { %p428_p0 = pneg %p427_p12 }
  0x4b   : > { %p434_p1 = por %p433_p13, %p432_p11 }
  0x4d   : > { %p435_p4 = pnand %p434_p1, %p428_p0 }
  0xb3   : > { %v174_v4 = vpop.permute.xlu1 %173  ;;  %v170_v5 = vpop.permute.xlu0 %169 }
  0xb4   : > { %303 = vst.msk [vmem:[%s151_s18 + $0x30] sm:$0xff] %vm156_vm0, %v174_v4  ;;  %301 = vst.msk [vmem:[%s151_s18 + $0x20] sm:$0xff] %vm156_vm0, %v170_v5 }
  0xb7   : > { %v176_v6 = vpop.permute.xlu1 %175  ;;  %v172_v7 = vpop.permute.xlu0 %171 }
  0xb8   : > { %304 = vst.msk [vmem:[%s151_s18 + $0x38] sm:$0xff] %vm156_vm0, %v176_v6  ;;  %302 = vst.msk [vmem:[%s151_s18 + $0x28] sm:$0xff] %vm156_vm0, %v172_v7 }
  0xb9   : > { %438 = shalt.err (!%p435_p4)
}
  0xba   : > { %s439_s30 = scalar_lea.hbm %s691_s9, 1024  ;;  %s443_s18 = scalar_lea.hbm %s748_s1, 4096 }
  0xbb   : > { %p440_p3 = scmp.ne.s32.totalorder %s691_s9, %s439_s30  ;;  %p444_p2 = scmp.lt.u32.totalorder %s691_s9, %s748_s1 }
  0xbc   : > { %p445_p5 = scmp.lt.u32.totalorder %s443_s18, %s439_s30  ;;  %p447_p8 = scmp.lt.u32.totalorder %s439_s30, %s691_s9 }
  0xbd   : > { %p441_p6 = pnand %p440_p3, %p755_p9 }
  0xbe   : > { %p446_p10 = por %p445_p5, %p444_p2 }
  0xbf   : > { %p442_p7 = pneg %p441_p6 }
  0xc0   : > { %p448_p12 = por %p447_p8, %p446_p10 }
  0xc2   : > { %p449_p0 = pnand %p448_p12, %p442_p7 }
  0xc4   : > { %452 = shalt.err (!%p449_p0)
}
  0xc5   : > { %s531_s26 = smov 128   ;;  %s532_s4 = smov 8  }
  0xc6   : > { %313 = dma.vmem_to_hbm [thread:$0]  (%p755_p9), %s686_s2, 1024, %s691_s9, %s187_s10, %s531_s26, %s531_s26, %s532_s4  }
  0xc7 PF: > { %p324_p11 = scmp.ge.s32.totalorder %s523_s13, 2  ;;  %s217_s5 = sand.u32 1, %s495_s6  }
  0xc8   : > { %p756_p13 = scmp.ne.s32.totalorder %s753_s25, 0  ;;  %s218_s14 = scalar_lea.sflag [#allocation4], %s217_s5 }
  0xca   : > { %p320_p1 = pnand %p324_p11, %p756_p13 }
  0xcc   : > { %490 = dma.done.wait (!%p320_p1), %s218_s14, 1024  }
  0xcd   : > { %492 = vsyncadd (!%p320_p1), %s218_s14, 4294966272  ;;  %s17_s13 = sadd.s32 1, %s523_s13   ;;  %s757_s6 = smov %s499_s7 }
  0xce   : > { %p14_p4 = scmp.ge.s32.totalorder %s17_s13, 6   ;;  %s758_s7 = smov %s503_s8 }
  0xcf   : > { %s759_s8 = smov %s621_s27  ;;  %s760_s9 = smov %s515_s11 }
  0xd0   : > { %s761_s10 = smov %s519_s12  ;;  %s762_s11 = smov %s765_s16 }
  0xd1   : > { %s763_s12 = smov %s769_s17  ;;  %16 = sbr.rel (!%p14_p4) target bundleno = 7 (0x7), region = 70 }
  0xd8   :  { %223 = vsyncpa [#allocation3], 1 }
  0xd9   :  { %225 = vsyncpa [#allocation3 + $0x1], 1 }
  0xda   :  { %226 = vsyncpa [#allocation4], 1 }
  0xdb   :  { %228 = vsyncpa [#allocation4 + $0x1], 1 }

</bundles_post_ra>
